<compile_context>
chip_gen: v7x
topology: tpu7x:2x2x1
jax: 0.10.0
libtpu: 0.0.40
codegen_flags: <defaults>
</compile_context>

<pallas_src>
import functools

import jax
import jax.numpy as jnp
from jax.experimental import pallas as pl
from jax.experimental.pallas import tpu as pltpu


def _label_smooth_ce_kernel(
    logits_ref,
    targets_ref,
    out_ref,
    *,
    epsilon,
    num_classes,
    n_valid,
    block_rows,
    needs_mask,
):
    # logits_ref : (TN, C) model dtype (f32/bf16) in VMEM
    # targets_ref: (TN, 1) i32 in VMEM
    # out_ref    : (8, 128) f32 in VMEM — partial sum for this tile, lane-dense broadcast
    x = logits_ref[...].astype(jnp.float32)                          # (TN, C)
    tn, c = x.shape

    # Row-wise numerically-stable pieces of log_softmax.
    m = jnp.max(x, axis=1, keepdims=True)                            # (TN, 1)
    shifted = x - m                                                  # (TN, C)
    lse = jnp.log(jnp.sum(jnp.exp(shifted), axis=1, keepdims=True))  # (TN, 1)

    # x[i, t_i] - m_i via iota-compare + select + row sum (no one-hot tensor kept).
    tgt = targets_ref[...]                                           # (TN, 1) i32
    class_ids = jax.lax.broadcasted_iota(jnp.int32, (tn, c), 1)
    picked = jnp.sum(
        jnp.where(class_ids == tgt, shifted, 0.0), axis=1, keepdims=True
    )                                                                # (TN, 1)

    # sum_j (x_ij - m_i), needed for the uniform-smoothing term.
    sum_shifted = jnp.sum(shifted, axis=1, keepdims=True)            # (TN, 1)

    # loss_i = sum_j [(1-eps)*onehot + eps/C] * (lse - shifted_j)
    #        = lse - (1-eps)*picked - (eps/C)*sum_shifted
    loss_rows = lse - (1.0 - epsilon) * picked - (epsilon / num_classes) * sum_shifted

    if needs_mask:
        # Mask rows that are padding (global row index >= true batch size).
        row_ids = pl.program_id(0) * block_rows + jax.lax.broadcasted_iota(
            jnp.int32, (tn, 1), 0
        )
        loss_rows = jnp.where(row_ids < n_valid, loss_rows, 0.0)

    partial = jnp.sum(loss_rows, keepdims=True)                      # (1, 1)
    out_ref[...] = jnp.broadcast_to(partial, (8, 128))               # lane-dense store


def _round_up(x, m):
    return ((x + m - 1) // m) * m


def _pick_block_rows(n, c, itemsize, *, max_rows=1024, vmem_budget_bytes=8 * 1024 * 1024):
    """Rows per tile: multiple of 16 (bf16-legal), sized so the f32 working copy plus the
    double-buffered native-dtype input tile stay within a modest VMEM budget."""
    per_row = c * (8 + 2 * itemsize)  # ~2 f32 temporaries + 2x double-buffered input row
    rows = vmem_budget_bytes // max(per_row, 1)
    rows = max(16, min(int(rows), max_rows, _round_up(n, 16)))
    rows = (rows // 16) * 16
    return max(16, rows)


def cross_entropy_label_smooth(logits, targets, *, num_classes, epsilon):
    """logits: (N, num_classes) float (f32 or bf16); targets: (N,) int. Returns scalar f32."""
    n, c = logits.shape
    assert c == num_classes

    tn = _pick_block_rows(n, c, jnp.dtype(logits.dtype).itemsize)
    n_pad = _round_up(n, tn)
    num_tiles = n_pad // tn

    targets2d = targets.astype(jnp.int32).reshape(n, 1)
    if n_pad != n:  # no-op when N is already a multiple of the tile size
        logits = jnp.pad(logits, ((0, n_pad - n), (0, 0)))
        targets2d = jnp.pad(targets2d, ((0, n_pad - n), (0, 0)))

    kernel = functools.partial(
        _label_smooth_ce_kernel,
        epsilon=float(epsilon),
        num_classes=int(num_classes),
        n_valid=int(n),
        block_rows=int(tn),
        needs_mask=(n_pad != n),
    )

    partials = pl.pallas_call(
        kernel,
        out_shape=jax.ShapeDtypeStruct((num_tiles * 8, 128), jnp.float32),
        grid=(num_tiles,),
        in_specs=[
            pl.BlockSpec((tn, c), lambda i: (i, 0)),   # logits tile (native dtype)
            pl.BlockSpec((tn, 1), lambda i: (i, 0)),   # targets tile
        ],
        out_specs=pl.BlockSpec((8, 128), lambda i: (i, 0)),
        compiler_params=pltpu.CompilerParams(
            dimension_semantics=("parallel",),
        ),
    )(logits, targets2d)

    # One scalar per tile lives at row i*8, lane 0; final reduce + divide by true N on host.
    return jnp.sum(partials[::8, 0]) / jnp.float32(n)


def _reference(logits, targets, num_classes, epsilon):
    # pure-JAX reference mirroring the PyTorch module
    log_probs = jax.nn.log_softmax(logits.astype(jnp.float32), axis=1)
    one_hot = jax.nn.one_hot(targets, num_classes, dtype=jnp.float32)
    smoothed = (1.0 - epsilon) * one_hot + epsilon / num_classes
    return jnp.sum(jnp.mean(-smoothed * log_probs, axis=0))


if __name__ == "__main__":
    key = jax.random.PRNGKey(0)
    batch = 8
    num_classes = 32
    epsilon = 0.1

    k_logits, k_tgt = jax.random.split(key)
    logits = jax.random.normal(k_logits, (batch, num_classes), dtype=jnp.float32)
    targets = jax.random.randint(k_tgt, (batch,), 0, num_classes, dtype=jnp.int32)

    loss = cross_entropy_label_smooth(
        logits, targets, num_classes=num_classes, epsilon=epsilon
    )
    loss = jax.block_until_ready(loss)

    ref = jax.block_until_ready(_reference(logits, targets, num_classes, epsilon))
    assert jnp.allclose(loss, ref, rtol=1e-5, atol=1e-5), (loss, ref)

    print("KERNEL_OK")
</pallas_src>

<mosaic_0001>
module attributes {stable_mosaic.version = 11 : i64} {
  func.func @_label_smooth_ce_kernel(%arg0: i32, %arg1: memref<16x32xf32, #tpu.memory_space<vmem>>, %arg2: memref<16x1xi32, #tpu.memory_space<vmem>>, %arg3: memref<8x128xf32, #tpu.memory_space<vmem>>) attributes {dimension_semantics = [#tpu.dimension_semantics<parallel>], iteration_bounds = array<i64: 1>, scalar_prefetch = 0 : i64, scratch_operands = 0 : i64, tpu.core_type = #tpu.core_type<tc>, window_params = [{transform_indices = @transform_0, window_bounds = array<i64: 16, 32>}, {transform_indices = @transform_1, window_bounds = array<i64: 16, 1>}, {transform_indices = @transform_2, window_bounds = array<i64: 8, 128>}]} {
    %c0 = arith.constant 0 : index
    %c0_0 = arith.constant 0 : index
    %0 = vector.load %arg1[%c0, %c0_0] : memref<16x32xf32, #tpu.memory_space<vmem>>, vector<16x32xf32>
    %cst = arith.constant dense<0xFF800000> : vector<16xf32>
    %1 = vector.multi_reduction <maximumf>, %0, %cst [1] : vector<16x32xf32> to vector<16xf32>
    %2 = vector.shape_cast %1 : vector<16xf32> to vector<16x1xf32>
    %3 = vector.broadcast %2 : vector<16x1xf32> to vector<16x32xf32>
    %4 = arith.subf %0, %3 : vector<16x32xf32>
    %5 = math.exp %4 : vector<16x32xf32>
    %cst_1 = arith.constant dense<0.000000e+00> : vector<16xf32>
    %6 = vector.multi_reduction <add>, %5, %cst_1 [1] : vector<16x32xf32> to vector<16xf32>
    %7 = vector.shape_cast %6 : vector<16xf32> to vector<16x1xf32>
    %8 = math.log %7 : vector<16x1xf32>
    %c0_2 = arith.constant 0 : index
    %c0_3 = arith.constant 0 : index
    %9 = vector.load %arg2[%c0_2, %c0_3] : memref<16x1xi32, #tpu.memory_space<vmem>>, vector<16x1xi32>
    %10 = tpu.iota {dimensions = array<i32: 1>} : vector<16x32xi32>
    %11 = vector.broadcast %9 : vector<16x1xi32> to vector<16x32xi32>
    %12 = arith.cmpi eq, %10, %11 : vector<16x32xi32>
    %cst_4 = arith.constant 0.000000e+00 : f32
    %13 = vector.broadcast %cst_4 : f32 to vector<16x32xf32>
    %14 = arith.select %12, %4, %13 : vector<16x32xi1>, vector<16x32xf32>
    %cst_5 = arith.constant dense<0.000000e+00> : vector<16xf32>
    %15 = vector.multi_reduction <add>, %14, %cst_5 [1] : vector<16x32xf32> to vector<16xf32>
    %16 = vector.shape_cast %15 : vector<16xf32> to vector<16x1xf32>
    %cst_6 = arith.constant dense<0.000000e+00> : vector<16xf32>
    %17 = vector.multi_reduction <add>, %4, %cst_6 [1] : vector<16x32xf32> to vector<16xf32>
    %18 = vector.shape_cast %17 : vector<16xf32> to vector<16x1xf32>
    %cst_7 = arith.constant 0.899999976 : f32
    %19 = vector.broadcast %cst_7 : f32 to vector<16x1xf32>
    %20 = arith.mulf %19, %16 : vector<16x1xf32>
    %21 = arith.subf %8, %20 : vector<16x1xf32>
    %cst_8 = arith.constant 3.125000e-03 : f32
    %22 = vector.broadcast %cst_8 : f32 to vector<16x1xf32>
    %23 = arith.mulf %22, %18 : vector<16x1xf32>
    %24 = arith.subf %21, %23 : vector<16x1xf32>
    %c16_i32 = arith.constant 16 : i32
    %25 = arith.muli %arg0, %c16_i32 : i32
    %26 = tpu.iota {dimensions = array<i32: 0>} : vector<16x1xi32>
    %27 = vector.broadcast %25 : i32 to vector<16x1xi32>
    %28 = arith.addi %27, %26 : vector<16x1xi32>
    %c8_i32 = arith.constant 8 : i32
    %29 = vector.broadcast %c8_i32 : i32 to vector<16x1xi32>
    %30 = arith.cmpi slt, %28, %29 : vector<16x1xi32>
    %cst_9 = arith.constant 0.000000e+00 : f32
    %31 = vector.broadcast %cst_9 : f32 to vector<16x1xf32>
    %32 = arith.select %30, %24, %31 : vector<16x1xi1>, vector<16x1xf32>
    %33 = vector.shape_cast %32 : vector<16x1xf32> to vector<1x16x1xf32>
    %cst_10 = arith.constant dense<0.000000e+00> : vector<1xf32>
    %34 = vector.multi_reduction <add>, %33, %cst_10 [1, 2] : vector<1x16x1xf32> to vector<1xf32>
    %35 = vector.shape_cast %34 : vector<1xf32> to vector<1x1x1xf32>
    %36 = vector.extract %35[0, 0, 0] : f32 from vector<1x1x1xf32>
    %37 = vector.broadcast %36 : f32 to vector<1x1xf32>
    %38 = vector.shape_cast %37 : vector<1x1xf32> to vector<1x1xf32>
    %39 = vector.broadcast %38 : vector<1x1xf32> to vector<8x128xf32>
    %c0_11 = arith.constant 0 : index
    %c0_12 = arith.constant 0 : index
    %40 = vector.load %arg3[%c0_11, %c0_12] : memref<8x128xf32, #tpu.memory_space<vmem>>, vector<8x128xf32>
    tpu.vector_store %arg3[%c0_11, %c0_12], %39 {strides = array<i32>} : memref<8x128xf32, #tpu.memory_space<vmem>>, vector<8x128xf32>,
    return
  }
  func.func @transform_0(%arg0: i32) -> (i32, i32) {
    %c0_i32 = arith.constant 0 : i32
    %c0_i32_0 = arith.constant 0 : i32
    return %arg0, %c0_i32 : i32, i32
  }
  func.func @transform_1(%arg0: i32) -> (i32, i32) {
    %c0_i32 = arith.constant 0 : i32
    %c0_i32_0 = arith.constant 0 : i32
    return %arg0, %c0_i32 : i32, i32
  }
  func.func @transform_2(%arg0: i32) -> (i32, i32) {
    %c0_i32 = arith.constant 0 : i32
    %c0_i32_0 = arith.constant 0 : i32
    return %arg0, %c0_i32 : i32, i32
  }
}

</mosaic_0001>

<bundles_post_ra>
// kernel: tpu_custom_call.1
= control target key start
LH: loop header
LB: loop body
LE: loop exit
PB: predicated region body
PF: predicated region fallthrough
CT: control target
= control target key end

     0   :  { %vm14_vm0 = vcmask 261120   ;;  %s183_s0 = inlined_call_operand.vmem [shape: f32[16,32], index: 0, kind: input, shape index: {}]   ;;  %s184_s1 = inlined_call_operand.vmem [shape: s32[16,1], index: 1, kind: input, shape index: {}]   ;;  %s185_s2 = inlined_call_operand.hbm [shape: f32[8,128], index: 2, kind: output, shape index: {}]  }
   0x1   :  { %v12_v0 = vld [vmem:[%s183_s0] sm:$0xff] }
   0x2   :  { %7 = vsyncpa [#allocation3], 0  ;;  %v15_v1 = vsel %vm14_vm0, %v12_v0, -inf  ;;  %v144_v2 = vmov 0   ;;  %v37_v3 = vld [vmem:[%s184_s1] sm:$0xff]  ;;  %v39_v7 = vlaneseq  ;;  %vm82_vm2 = vcmask 7168  }
   0x3   :  { %115 = vset.pattern.permute.xlu0 %v144_v2  ;;  %s145_s0 = smov [#allocation2]  }
   0x4   :  { %16 = vmax.xlane.f32.xlu0 %v15_v1  ;;  %v40_v8 = vand.u32 127, %v39_v7  ;;  %s103_s1 = sshll.u32 %s145_s0, 4  ;;  %s104_s1 = int_to_ptr.vmem [resolvable:$true] %s103_s1 }
   0x5   :  { %s120_s14 = scalar_lea.vmem %s104_s1, 128  ;;  %p125_p1 = scmp.lt.s32.totalorder %s104_s1, %s104_s1 }
   0x6   :  { %p121_p0 = scmp.ne.s32.totalorder %s104_s1, %s120_s14  ;;  %p126_p2 = scmp.lt.s32.totalorder %s120_s14, %s120_s14 }
   0x8   :  { %p127_p3 = por %p126_p2, %p125_p1 }
   0xa   :  { %p128_p4 = pnand %p127_p3, %p121_p0 }
  0x1a   :  { %42 = vperm.xlu0 %115, %v37_v3  }
  0x91   :  { %v17_v4 = vpop.xlane.xlu0 %16 }
  0x92   :  { %v21_v5 = vsub.f32 %v12_v0, %v17_v4 }
  0x94   :  { %v23_v6 = vmul.f32 1.442695, %v21_v5  ;;  %v57_v14 = vsel %vm14_vm0, %v21_v5, 0.0 }
  0x96   :  { %116 = vpow2.f32 %v23_v6 }
  0x99   :  { %v43_v9 = vpop.permute.xlu0 %42 }
  0x9a   :  { %vm47_vm1 = vcmp.eq.s32.totalorder %v40_v8, %v43_v9 }
  0x9b   :  { %v49_v12 = vsel %vm47_vm1, %v21_v5, 0.0 }
  0x9c   :  { %v51_v13 = vsel %vm14_vm0, %v49_v12, 0.0 }
  0xa0   :  { %v117_v10 = vpop.eup %116 }
  0xa1   :  { %v27_v11 = vsel %vm14_vm0, %v117_v10, 0.0 }
  0xa2   :  { %28 = vadd.xlane.f32.xlu1 %v27_v11 }
  0xa6   :  { %52 = vadd.xlane.f32.xlu1 %v51_v13 }
  0xaa   :  { %58 = vadd.xlane.f32.xlu1 %v57_v14 }
 0x12f   :  { %v29_v15 = vpop.xlane.xlu1 %28 }
 0x130   :  { %118 = vlog2.f32 %v29_v15 }
 0x133   :  { %v53_v16 = vpop.xlane.xlu1 %52 }
 0x134   :  { %v63_v20 = vmul.f32 0.9, %v53_v16 }
 0x137   :  { %v59_v18 = vpop.xlane.xlu1 %58 }
 0x138   :  { %v67_v22 = vmul.f32 0.003125, %v59_v18 }
 0x13a   :  { %v119_v17 = vpop.eup %118 }
 0x13b   :  { %v34_v19 = vmul.f32 0.6931472, %v119_v17 }
 0x13d   :  { %v65_v21 = vsub.f32 %v34_v19, %v63_v20 }
 0x13f   :  { %v69_v23 = vsub.f32 %v65_v21, %v67_v22 }
 0x141   :  { %v83_v24 = vsel %vm82_vm2, %v69_v23, 0.0 }
 0x142   :  { %86 = vadd.xlane.f32.xlu1 %v83_v24 }
 0x1cf   :  { %v87_v25 = vpop.xlane.xlu1 %86 }
 0x1d0   :  { %v88_v26 = vrot.slane %v87_v25, 4 }
 0x1d2   :  { %v89_v27 = vadd.f32 %v88_v26, %v87_v25 }
 0x1d4   :  { %v90_v28 = vrot.slane %v89_v27, 2 }
 0x1d6   :  { %v91_v29 = vadd.f32 %v90_v28, %v89_v27 }
 0x1d8   :  { %v92_v30 = vrot.slane %v91_v29, 1 }
 0x1da   :  { %v93_v31 = vadd.f32 %v92_v30, %v91_v29 }
 0x1dc   :  { %111 = vpush %v93_v31 }
 0x20d   :  { %s112_s13 = spop %111 }
 0x20e   :  { %v95_v32 = vstv %s112_s13 }
 0x20f   :  { %96 = vst [vmem:[#allocation2] sm:$0xff] %v95_v32 }
 0x210   :  { %131 = shalt.err (!%p128_p4)
}
 0x211   :  { %s132_s17 = scalar_lea.hbm %s185_s2, 128 }
 0x212   :  { %p133_p5 = scmp.ne.s32.totalorder %s185_s2, %s132_s17  ;;  %p136_p6 = scmp.lt.u32.totalorder %s132_s17, %s185_s2 }
 0x214   :  { %p138_p7 = pnand %p136_p6, %p133_p5 }
 0x216   :  { %141 = shalt.err (!%p138_p7)
}
 0x217   :  { %106 = dma.vmem_to_hbm [thread:$0]  %s104_s1, 128, %s185_s2, [#allocation3]  }
 0x218   :  { %142 = dma.done.wait [#allocation3], 128  }
 0x219   :  { %143 = vsyncadd [#allocation3], 4294967168 }
 0x21a   :  { %110 = vsyncpa [#allocation3], 1 }

</bundles_post_ra>
